<compile_context>
chip_gen: v7x
topology: tpu7x:2x2x1
jax: 0.10.0
libtpu: 0.0.40
codegen_flags: <defaults>
</compile_context>

<pallas_src>
import functools
import math

import jax
import jax.numpy as jnp
from jax.experimental import pallas as pl
from jax.experimental.pallas import tpu as pltpu


# ----------------------------- kernels ---------------------------------------

def _layernorm_f32(x, gamma, beta):
    # nn.LayerNorm defaults: biased variance, eps = 1e-5.
    mean = jnp.mean(x, axis=-1, keepdims=True)
    var = jnp.mean((x - mean) ** 2, axis=-1, keepdims=True)
    return (x - mean) * jax.lax.rsqrt(var + 1e-5) * gamma + beta


def msa_block_kernel(x_ref, g_ref, beta_ref,
                     wq_ref, wk_ref, wv_ref,
                     bq_ref, bk_ref, bv_ref,
                     wo_ref, bo_ref,
                     o_ref, xn_sc, *, scale):
    """Fused LN1 + MSA + residual.  Grid = (batch, head); head axis accumulates."""
    h = pl.program_id(1)
    bf16 = jnp.bfloat16

    @pl.when(h == 0)
    def _init():
        x = x_ref[0]                                         # (S, E) f32
        xn = _layernorm_f32(x, g_ref[...], beta_ref[...])    # f32 LN math
        xn_sc[...] = xn.astype(xn_sc.dtype)                  # cached bf16 for the MXU
        o_ref[0] = x + bo_ref[...]                           # residual + out-proj bias (once)

    xn = xn_sc[...]                                          # (S, E) bf16
    # Per-head projections; weight slices arrive via BlockSpec (E, dh) / (dh, E) blocks.
    q = jnp.dot(xn, wq_ref[0], preferred_element_type=jnp.float32) + bq_ref[0]   # (S, dh) f32
    k = jnp.dot(xn, wk_ref[0], preferred_element_type=jnp.float32) + bk_ref[0]
    v = jnp.dot(xn, wv_ref[0], preferred_element_type=jnp.float32) + bv_ref[0]

    q = q * scale
    kt = k.T                                                 # minor 2-D transpose (XLU)
    s = jnp.dot(q.astype(bf16), kt.astype(bf16),
                preferred_element_type=jnp.float32)          # (S, S) scores, f32 acc
    s = s - jnp.max(s, axis=-1, keepdims=True)
    p = jnp.exp(s)
    p = p * pl.reciprocal(jnp.sum(p, axis=-1, keepdims=True), approx=True)

    attn = jnp.dot(p.astype(bf16), v.astype(bf16),
                   preferred_element_type=jnp.float32)       # (S, dh)
    # Accumulate this head's contribution to the (resident) output block.
    o_ref[0] = o_ref[0] + jnp.dot(attn.astype(bf16), wo_ref[0],
                                  preferred_element_type=jnp.float32)


def mlp_block_kernel(x_ref, g_ref, beta_ref, w1_ref, b1_ref, w2_ref, b2_ref, o_ref):
    """Fused LN2 + Linear + exact GELU + Linear + residual over a row tile of tokens."""
    bf16 = jnp.bfloat16
    x = x_ref[...]                                           # (TN, E) f32 (residual source)
    xn = _layernorm_f32(x, g_ref[...], beta_ref[...])
    h = jnp.dot(xn.astype(bf16), w1_ref[...],
                preferred_element_type=jnp.float32) + b1_ref[...]
    h = 0.5 * h * (1.0 + jax.lax.erf(h * 0.7071067811865476))   # exact GELU (nn.GELU default)
    y = jnp.dot(h.astype(bf16), w2_ref[...],
                preferred_element_type=jnp.float32) + b2_ref[...]
    o_ref[...] = (y + x).astype(o_ref.dtype)


# ----------------------------- wrappers ---------------------------------------

def _row_tile(n):
    """Largest 'nice' row tile that divides n and gives >= 2 grid steps when possible."""
    for t in (512, 256, 128, 64, 32, 16, 8):
        if n % t == 0 and n // t >= 2:
            return t
    return n


def _prep_params(p, num_heads):
    """Rearrange weights to kernel-facing layouts (head-major) and cast MXU operands to bf16."""
    E = p["wq_t"].shape[0]
    dh = E // num_heads
    bf16 = jnp.bfloat16

    def qkv_w(w):   # (E_in, E_out) -> (H, E_in, dh)
        return jnp.transpose(w.reshape(E, num_heads, dh), (1, 0, 2)).astype(bf16)

    def qkv_b(b):   # (1, E) -> (H, 1, dh)
        return b.reshape(num_heads, 1, dh).astype(jnp.float32)

    return {
        "ln1_g": p["ln1_g"], "ln1_b": p["ln1_b"],
        "ln2_g": p["ln2_g"], "ln2_b": p["ln2_b"],
        "wq": qkv_w(p["wq_t"]), "wk": qkv_w(p["wk_t"]), "wv": qkv_w(p["wv_t"]),
        "bq": qkv_b(p["bq"]), "bk": qkv_b(p["bk"]), "bv": qkv_b(p["bv"]),
        "wo": p["wo_t"].reshape(num_heads, dh, E).astype(bf16),   # (H, dh, E)
        "bo": p["bo"],
        "w1": p["w1_t"].astype(bf16), "b1": p["b1"],
        "w2": p["w2_t"].astype(bf16), "b2": p["b2"],
    }


def _msa_block(x, pp, num_heads):
    B, S, E = x.shape
    dh = E // num_heads
    kern = functools.partial(msa_block_kernel, scale=1.0 / math.sqrt(dh))

    x_spec = pl.BlockSpec((1, S, E), lambda b, h: (b, 0, 0))
    vec_spec = pl.BlockSpec((1, E), lambda b, h: (0, 0))
    qkvw_spec = pl.BlockSpec((1, E, dh), lambda b, h: (h, 0, 0))
    qkvb_spec = pl.BlockSpec((1, 1, dh), lambda b, h: (h, 0, 0))
    wo_spec = pl.BlockSpec((1, dh, E), lambda b, h: (h, 0, 0))

    return pl.pallas_call(
        kern,
        out_shape=jax.ShapeDtypeStruct((B, S, E), x.dtype),
        grid=(B, num_heads),
        in_specs=[x_spec, vec_spec, vec_spec,
                  qkvw_spec, qkvw_spec, qkvw_spec,
                  qkvb_spec, qkvb_spec, qkvb_spec,
                  wo_spec, vec_spec],
        out_specs=x_spec,
        scratch_shapes=[pltpu.VMEM((S, E), jnp.bfloat16)],
        input_output_aliases={0: 0},
        compiler_params=pltpu.CompilerParams(
            dimension_semantics=("parallel", "arbitrary")),
    )(x, pp["ln1_g"], pp["ln1_b"],
      pp["wq"], pp["wk"], pp["wv"],
      pp["bq"], pp["bk"], pp["bv"],
      pp["wo"], pp["bo"])


def _mlp_block(x2d, pp):
    N, E = x2d.shape
    M = pp["w1"].shape[1]
    tn = _row_tile(N)
    row_spec = pl.BlockSpec((tn, E), lambda i: (i, 0))
    const = lambda shape: pl.BlockSpec(shape, lambda i: (0, 0))

    return pl.pallas_call(
        mlp_block_kernel,
        out_shape=jax.ShapeDtypeStruct((N, E), x2d.dtype),
        grid=(N // tn,),
        in_specs=[row_spec,
                  const((1, E)), const((1, E)),
                  const((E, M)), const((1, M)),
                  const((M, E)), const((1, E))],
        out_specs=row_spec,
        input_output_aliases={0: 0},
        compiler_params=pltpu.CompilerParams(dimension_semantics=("parallel",)),
    )(x2d, pp["ln2_g"], pp["ln2_b"], pp["w1"], pp["b1"], pp["w2"], pp["b2"])


@functools.partial(jax.jit, static_argnames=("num_heads",))
def encoder_forward(x, params, num_heads):
    """x: (B, S, E) float32 -> (B, S, E) float32. Mirrors Encoder.forward (eval mode)."""
    B, S, E = x.shape
    pp = _prep_params(params, num_heads)
    x1 = _msa_block(x, pp, num_heads)               # x = MSA(LN1(x)) + x
    x2 = _mlp_block(x1.reshape(B * S, E), pp)       # x = MLP(LN2(x)) + x
    return x2.reshape(B, S, E)


# ----------------------------- reference (pure JAX, f32) ----------------------

def encoder_reference(x, p, num_heads):
    def ln(v, g, b):
        m = jnp.mean(v, -1, keepdims=True)
        var = jnp.mean((v - m) ** 2, -1, keepdims=True)
        return (v - m) * jax.lax.rsqrt(var + 1e-5) * g[0] + b[0]

    B, S, E = x.shape
    dh = E // num_heads

    xn = ln(x, p["ln1_g"], p["ln1_b"])
    q = xn @ p["wq_t"] + p["bq"][0]
    k = xn @ p["wk_t"] + p["bk"][0]
    v = xn @ p["wv_t"] + p["bv"][0]
    q = q.reshape(B, S, num_heads, dh).transpose(0, 2, 1, 3)
    k = k.reshape(B, S, num_heads, dh).transpose(0, 2, 1, 3)
    v = v.reshape(B, S, num_heads, dh).transpose(0, 2, 1, 3)
    s = jnp.einsum("bhqd,bhkd->bhqk", q, k) / math.sqrt(dh)
    a = jax.nn.softmax(s, axis=-1)
    o = jnp.einsum("bhqk,bhkd->bhqd", a, v).transpose(0, 2, 1, 3).reshape(B, S, E)
    x1 = o @ p["wo_t"] + p["bo"][0] + x

    xn2 = ln(x1, p["ln2_g"], p["ln2_b"])
    h = xn2 @ p["w1_t"] + p["b1"][0]
    h = 0.5 * h * (1.0 + jax.lax.erf(h * 0.7071067811865476))
    return h @ p["w2_t"] + p["b2"][0] + x1


# ----------------------------- params & main ----------------------------------

def init_params(key, embedding_dim, mlp_size):
    E, M = embedding_dim, mlp_size
    ks = jax.random.split(key, 12)
    std = 0.02
    f32 = jnp.float32
    return {
        "ln1_g": 1.0 + 0.1 * jax.random.normal(ks[8], (1, E), f32),
        "ln1_b": 0.1 * jax.random.normal(ks[9], (1, E), f32),
        "ln2_g": 1.0 + 0.1 * jax.random.normal(ks[10], (1, E), f32),
        "ln2_b": 0.1 * jax.random.normal(ks[11], (1, E), f32),
        # attention projections stored pre-transposed: y = x @ W_t + b
        "wq_t": jax.random.normal(ks[0], (E, E), f32) * std,
        "wk_t": jax.random.normal(ks[1], (E, E), f32) * std,
        "wv_t": jax.random.normal(ks[2], (E, E), f32) * std,
        "bq": jax.random.normal(ks[5], (1, E), f32) * std,
        "bk": jax.random.normal(ks[6], (1, E), f32) * std,
        "bv": jax.random.normal(ks[7], (1, E), f32) * std,
        "wo_t": jax.random.normal(ks[3], (E, E), f32) * std,
        "bo": jax.random.normal(ks[4], (1, E), f32) * std,
        # MLP
        "w1_t": jax.random.normal(ks[0], (E, M), f32) * std,
        "b1": jax.random.normal(ks[1], (1, M), f32) * std,
        "w2_t": jax.random.normal(ks[2], (M, E), f32) * std,
        "b2": jax.random.normal(ks[3], (1, E), f32) * std,
    }


if __name__ == "__main__":
    B, S, E, H, M = 2, 8, 32, 4, 64  # small shapes; E % H == 0

    key = jax.random.PRNGKey(0)
    kx, kp = jax.random.split(key)
    x = jax.random.normal(kx, (B, S, E), jnp.float32)
    params = init_params(kp, E, M)

    out = encoder_forward(x, params, num_heads=H)
    out = jax.block_until_ready(out)

    ref = encoder_reference(x, params, num_heads=H)
    assert out.shape == (B, S, E)
    # bf16 MXU operands + approx reciprocal softmax -> compare against f32 reference
    # with a loosened (but still tight) tolerance.
    assert jnp.allclose(out, ref, atol=2e-2, rtol=2e-2), "mismatch vs reference"

    print("KERNEL_OK")
</pallas_src>

<mosaic_0001>
module attributes {stable_mosaic.version = 11 : i64} {
  func.func @mlp_block_kernel(%arg0: i32, %arg1: memref<8x32xf32, #tpu.memory_space<vmem>>, %arg2: memref<1x32xf32, #tpu.memory_space<vmem>>, %arg3: memref<1x32xf32, #tpu.memory_space<vmem>>, %arg4: memref<32x64xbf16, #tpu.memory_space<vmem>>, %arg5: memref<1x64xf32, #tpu.memory_space<vmem>>, %arg6: memref<64x32xbf16, #tpu.memory_space<vmem>>, %arg7: memref<1x32xf32, #tpu.memory_space<vmem>>, %arg8: memref<8x32xf32, #tpu.memory_space<vmem>>) attributes {dimension_semantics = [#tpu.dimension_semantics<parallel>], iteration_bounds = array<i64: 2>, scalar_prefetch = 0 : i64, scratch_operands = 0 : i64, tpu.core_type = #tpu.core_type<tc>, window_params = [{transform_indices = @transform_0, window_bounds = array<i64: 8, 32>}, {pipeline_mode = #tpu.pipeline_mode<synchronous>, transform_indices = @transform_1, window_bounds = array<i64: 1, 32>}, {pipeline_mode = #tpu.pipeline_mode<synchronous>, transform_indices = @transform_2, window_bounds = array<i64: 1, 32>}, {pipeline_mode = #tpu.pipeline_mode<synchronous>, transform_indices = @transform_3, window_bounds = array<i64: 32, 64>}, {pipeline_mode = #tpu.pipeline_mode<synchronous>, transform_indices = @transform_4, window_bounds = array<i64: 1, 64>}, {pipeline_mode = #tpu.pipeline_mode<synchronous>, transform_indices = @transform_5, window_bounds = array<i64: 64, 32>}, {pipeline_mode = #tpu.pipeline_mode<synchronous>, transform_indices = @transform_6, window_bounds = array<i64: 1, 32>}, {transform_indices = @transform_7, window_bounds = array<i64: 8, 32>}]} {
    %c0 = arith.constant 0 : index
    %c0_0 = arith.constant 0 : index
    %0 = vector.load %arg1[%c0, %c0_0] : memref<8x32xf32, #tpu.memory_space<vmem>>, vector<8x32xf32>
    %c0_1 = arith.constant 0 : index
    %c0_2 = arith.constant 0 : index
    %1 = vector.load %arg2[%c0_1, %c0_2] : memref<1x32xf32, #tpu.memory_space<vmem>>, vector<1x32xf32>
    %c0_3 = arith.constant 0 : index
    %c0_4 = arith.constant 0 : index
    %2 = vector.load %arg3[%c0_3, %c0_4] : memref<1x32xf32, #tpu.memory_space<vmem>>, vector<1x32xf32>
    %cst = arith.constant dense<0.000000e+00> : vector<8xf32>
    %3 = vector.multi_reduction <add>, %0, %cst [1] : vector<8x32xf32> to vector<8xf32>
    %4 = vector.shape_cast %3 : vector<8xf32> to vector<8x1xf32>
    %cst_5 = arith.constant 3.200000e+01 : f32
    %5 = vector.broadcast %cst_5 : f32 to vector<8x1xf32>
    %6 = arith.divf %4, %5 : vector<8x1xf32>
    %7 = vector.broadcast %6 : vector<8x1xf32> to vector<8x32xf32>
    %8 = arith.subf %0, %7 : vector<8x32xf32>
    %9 = arith.mulf %8, %8 : vector<8x32xf32>
    %cst_6 = arith.constant dense<0.000000e+00> : vector<8xf32>
    %10 = vector.multi_reduction <add>, %9, %cst_6 [1] : vector<8x32xf32> to vector<8xf32>
    %11 = vector.shape_cast %10 : vector<8xf32> to vector<8x1xf32>
    %cst_7 = arith.constant 3.200000e+01 : f32
    %12 = vector.broadcast %cst_7 : f32 to vector<8x1xf32>
    %13 = arith.divf %11, %12 : vector<8x1xf32>
    %14 = vector.broadcast %6 : vector<8x1xf32> to vector<8x32xf32>
    %15 = arith.subf %0, %14 : vector<8x32xf32>
    %cst_8 = arith.constant 9.99999974E-6 : f32
    %16 = vector.broadcast %cst_8 : f32 to vector<8x1xf32>
    %17 = arith.addf %13, %16 : vector<8x1xf32>
    %18 = math.rsqrt %17 : vector<8x1xf32>
    %19 = vector.broadcast %18 : vector<8x1xf32> to vector<8x32xf32>
    %20 = arith.mulf %15, %19 : vector<8x32xf32>
    %21 = vector.broadcast %1 : vector<1x32xf32> to vector<8x32xf32>
    %22 = arith.mulf %20, %21 : vector<8x32xf32>
    %23 = vector.broadcast %2 : vector<1x32xf32> to vector<8x32xf32>
    %24 = arith.addf %22, %23 : vector<8x32xf32>
    %25 = arith.truncf %24 : vector<8x32xf32> to vector<8x32xbf16>
    %c0_9 = arith.constant 0 : index
    %c0_10 = arith.constant 0 : index
    %26 = vector.load %arg4[%c0_9, %c0_10] : memref<32x64xbf16, #tpu.memory_space<vmem>>, vector<32x64xbf16>
    %cst_11 = arith.constant dense<0.000000e+00> : vector<8x64xf32>
    %27 = tpu.matmul %25, %26, %cst_11 {dimension_numbers = #tpu.dot_dimension_numbers<[1], [0], [0], [1], [0, 0, 1, 1], [], []>} : vector<8x32xbf16>, vector<32x64xbf16>, vector<8x64xf32> -> vector<8x64xf32>
    %c0_12 = arith.constant 0 : index
    %c0_13 = arith.constant 0 : index
    %28 = vector.load %arg5[%c0_12, %c0_13] : memref<1x64xf32, #tpu.memory_space<vmem>>, vector<1x64xf32>
    %29 = vector.broadcast %28 : vector<1x64xf32> to vector<8x64xf32>
    %30 = arith.addf %27, %29 : vector<8x64xf32>
    %cst_14 = arith.constant 5.000000e-01 : f32
    %31 = vector.broadcast %cst_14 : f32 to vector<8x64xf32>
    %32 = arith.mulf %31, %30 : vector<8x64xf32>
    %cst_15 = arith.constant 0.707106769 : f32
    %33 = vector.broadcast %cst_15 : f32 to vector<8x64xf32>
    %34 = arith.mulf %30, %33 : vector<8x64xf32>
    %35 = math.erf %34 : vector<8x64xf32>
    %cst_16 = arith.constant 1.000000e+00 : f32
    %36 = vector.broadcast %cst_16 : f32 to vector<8x64xf32>
    %37 = arith.addf %36, %35 : vector<8x64xf32>
    %38 = arith.mulf %32, %37 : vector<8x64xf32>
    %39 = arith.truncf %38 : vector<8x64xf32> to vector<8x64xbf16>
    %c0_17 = arith.constant 0 : index
    %c0_18 = arith.constant 0 : index
    %40 = vector.load %arg6[%c0_17, %c0_18] : memref<64x32xbf16, #tpu.memory_space<vmem>>, vector<64x32xbf16>
    %cst_19 = arith.constant dense<0.000000e+00> : vector<8x32xf32>
    %41 = tpu.matmul %39, %40, %cst_19 {dimension_numbers = #tpu.dot_dimension_numbers<[1], [0], [0], [1], [0, 0, 1, 1], [], []>} : vector<8x64xbf16>, vector<64x32xbf16>, vector<8x32xf32> -> vector<8x32xf32>
    %c0_20 = arith.constant 0 : index
    %c0_21 = arith.constant 0 : index
    %42 = vector.load %arg7[%c0_20, %c0_21] : memref<1x32xf32, #tpu.memory_space<vmem>>, vector<1x32xf32>
    %43 = vector.broadcast %42 : vector<1x32xf32> to vector<8x32xf32>
    %44 = arith.addf %41, %43 : vector<8x32xf32>
    %45 = arith.addf %44, %0 : vector<8x32xf32>
    %c0_22 = arith.constant 0 : index
    %c0_23 = arith.constant 0 : index
    %46 = vector.load %arg8[%c0_22, %c0_23] : memref<8x32xf32, #tpu.memory_space<vmem>>, vector<8x32xf32>
    tpu.vector_store %arg8[%c0_22, %c0_23], %45 {strides = array<i32>} : memref<8x32xf32, #tpu.memory_space<vmem>>, vector<8x32xf32>,
    return
  }
  func.func @transform_0(%arg0: i32) -> (i32, i32) {
    %c0_i32 = arith.constant 0 : i32
    %c0_i32_0 = arith.constant 0 : i32
    return %arg0, %c0_i32 : i32, i32
  }
  func.func @transform_1(%arg0: i32) -> (i32, i32) {
    %c0_i32 = arith.constant 0 : i32
    %c0_i32_0 = arith.constant 0 : i32
    %c0_i32_1 = arith.constant 0 : i32
    return %c0_i32, %c0_i32_0 : i32, i32
  }
  func.func @transform_2(%arg0: i32) -> (i32, i32) {
    %c0_i32 = arith.constant 0 : i32
    %c0_i32_0 = arith.constant 0 : i32
    %c0_i32_1 = arith.constant 0 : i32
    return %c0_i32, %c0_i32_0 : i32, i32
  }
  func.func @transform_3(%arg0: i32) -> (i32, i32) {
    %c0_i32 = arith.constant 0 : i32
    %c0_i32_0 = arith.constant 0 : i32
    %c0_i32_1 = arith.constant 0 : i32
    return %c0_i32, %c0_i32_0 : i32, i32
  }
  func.func @transform_4(%arg0: i32) -> (i32, i32) {
    %c0_i32 = arith.constant 0 : i32
    %c0_i32_0 = arith.constant 0 : i32
    %c0_i32_1 = arith.constant 0 : i32
    return %c0_i32, %c0_i32_0 : i32, i32
  }
  func.func @transform_5(%arg0: i32) -> (i32, i32) {
    %c0_i32 = arith.constant 0 : i32
    %c0_i32_0 = arith.constant 0 : i32
    %c0_i32_1 = arith.constant 0 : i32
    return %c0_i32, %c0_i32_0 : i32, i32
  }
  func.func @transform_6(%arg0: i32) -> (i32, i32) {
    %c0_i32 = arith.constant 0 : i32
    %c0_i32_0 = arith.constant 0 : i32
    %c0_i32_1 = arith.constant 0 : i32
    return %c0_i32, %c0_i32_0 : i32, i32
  }
  func.func @transform_7(%arg0: i32) -> (i32, i32) {
    %c0_i32 = arith.constant 0 : i32
    %c0_i32_0 = arith.constant 0 : i32
    return %arg0, %c0_i32 : i32, i32
  }
}

module attributes {stable_mosaic.version = 11 : i64} {
  func.func @msa_block_kernel(%arg0: i32, %arg1: i32, %arg2: memref<1x8x32xf32, #tpu.memory_space<vmem>>, %arg3: memref<1x32xf32, #tpu.memory_space<vmem>>, %arg4: memref<1x32xf32, #tpu.memory_space<vmem>>, %arg5: memref<1x32x8xbf16, #tpu.memory_space<vmem>>, %arg6: memref<1x32x8xbf16, #tpu.memory_space<vmem>>, %arg7: memref<1x32x8xbf16, #tpu.memory_space<vmem>>, %arg8: memref<1x1x8xf32, #tpu.memory_space<vmem>>, %arg9: memref<1x1x8xf32, #tpu.memory_space<vmem>>, %arg10: memref<1x1x8xf32, #tpu.memory_space<vmem>>, %arg11: memref<1x8x32xbf16, #tpu.memory_space<vmem>>, %arg12: memref<1x32xf32, #tpu.memory_space<vmem>>, %arg13: memref<1x8x32xf32, #tpu.memory_space<vmem>>, %arg14: memref<8x32xbf16, #tpu.memory_space<vmem>>) attributes {dimension_semantics = [#tpu.dimension_semantics<parallel>, #tpu.dimension_semantics<arbitrary>], iteration_bounds = array<i64: 2, 4>, scalar_prefetch = 0 : i64, scratch_operands = 1 : i64, tpu.core_type = #tpu.core_type<tc>, window_params = [{transform_indices = @transform_0, window_bounds = array<i64: 1, 8, 32>}, {pipeline_mode = #tpu.pipeline_mode<synchronous>, transform_indices = @transform_1, window_bounds = array<i64: 1, 32>}, {pipeline_mode = #tpu.pipeline_mode<synchronous>, transform_indices = @transform_2, window_bounds = array<i64: 1, 32>}, {transform_indices = @transform_3, window_bounds = array<i64: 1, 32, 8>}, {transform_indices = @transform_4, window_bounds = array<i64: 1, 32, 8>}, {transform_indices = @transform_5, window_bounds = array<i64: 1, 32, 8>}, {transform_indices = @transform_6, window_bounds = array<i64: 1, 1, 8>}, {transform_indices = @transform_7, window_bounds = array<i64: 1, 1, 8>}, {transform_indices = @transform_8, window_bounds = array<i64: 1, 1, 8>}, {transform_indices = @transform_9, window_bounds = array<i64: 1, 8, 32>}, {pipeline_mode = #tpu.pipeline_mode<synchronous>, transform_indices = @transform_10, window_bounds = array<i64: 1, 32>}, {transform_indices = @transform_11, window_bounds = array<i64: 1, 8, 32>}]} {
    %c0_i32 = arith.constant 0 : i32
    %0 = arith.cmpi eq, %arg1, %c0_i32 : i32
    %1 = arith.extui %0 : i1 to i32
    %c0_i32_0 = arith.constant 0 : i32
    %2 = arith.cmpi ne, %1, %c0_i32_0 : i32
    scf.if %2 {
      %c0_37 = arith.constant 0 : index
      %c0_38 = arith.constant 0 : index
      %c0_39 = arith.constant 0 : index
      %54 = vector.load %arg2[%c0_37, %c0_38, %c0_39] : memref<1x8x32xf32, #tpu.memory_space<vmem>>, vector<1x8x32xf32>
      %55 = vector.shape_cast %54 : vector<1x8x32xf32> to vector<8x32xf32>
      %c0_40 = arith.constant 0 : index
      %c0_41 = arith.constant 0 : index
      %56 = vector.load %arg3[%c0_40, %c0_41] : memref<1x32xf32, #tpu.memory_space<vmem>>, vector<1x32xf32>
      %c0_42 = arith.constant 0 : index
      %c0_43 = arith.constant 0 : index
      %57 = vector.load %arg4[%c0_42, %c0_43] : memref<1x32xf32, #tpu.memory_space<vmem>>, vector<1x32xf32>
      %cst_44 = arith.constant dense<0.000000e+00> : vector<8xf32>
      %58 = vector.multi_reduction <add>, %55, %cst_44 [1] : vector<8x32xf32> to vector<8xf32>
      %59 = vector.shape_cast %58 : vector<8xf32> to vector<8x1xf32>
      %cst_45 = arith.constant 3.200000e+01 : f32
      %60 = vector.broadcast %cst_45 : f32 to vector<8x1xf32>
      %61 = arith.divf %59, %60 : vector<8x1xf32>
      %62 = vector.broadcast %61 : vector<8x1xf32> to vector<8x32xf32>
      %63 = arith.subf %55, %62 : vector<8x32xf32>
      %64 = arith.mulf %63, %63 : vector<8x32xf32>
      %cst_46 = arith.constant dense<0.000000e+00> : vector<8xf32>
      %65 = vector.multi_reduction <add>, %64, %cst_46 [1] : vector<8x32xf32> to vector<8xf32>
      %66 = vector.shape_cast %65 : vector<8xf32> to vector<8x1xf32>
      %cst_47 = arith.constant 3.200000e+01 : f32
      %67 = vector.broadcast %cst_47 : f32 to vector<8x1xf32>
      %68 = arith.divf %66, %67 : vector<8x1xf32>
      %69 = vector.broadcast %61 : vector<8x1xf32> to vector<8x32xf32>
      %70 = arith.subf %55, %69 : vector<8x32xf32>
      %cst_48 = arith.constant 9.99999974E-6 : f32
      %71 = vector.broadcast %cst_48 : f32 to vector<8x1xf32>
      %72 = arith.addf %68, %71 : vector<8x1xf32>
      %73 = math.rsqrt %72 : vector<8x1xf32>
      %74 = vector.broadcast %73 : vector<8x1xf32> to vector<8x32xf32>
      %75 = arith.mulf %70, %74 : vector<8x32xf32>
      %76 = vector.broadcast %56 : vector<1x32xf32> to vector<8x32xf32>
      %77 = arith.mulf %75, %76 : vector<8x32xf32>
      %78 = vector.broadcast %57 : vector<1x32xf32> to vector<8x32xf32>
      %79 = arith.addf %77, %78 : vector<8x32xf32>
      %80 = arith.truncf %79 : vector<8x32xf32> to vector<8x32xbf16>
      %c0_49 = arith.constant 0 : index
      %c0_50 = arith.constant 0 : index
      %81 = vector.load %arg14[%c0_49, %c0_50] : memref<8x32xbf16, #tpu.memory_space<vmem>>, vector<8x32xbf16>
      tpu.vector_store %arg14[%c0_49, %c0_50], %80 {strides = array<i32>} : memref<8x32xbf16, #tpu.memory_space<vmem>>, vector<8x32xbf16>,
      %c0_51 = arith.constant 0 : index
      %c0_52 = arith.constant 0 : index
      %82 = vector.load %arg12[%c0_51, %c0_52] : memref<1x32xf32, #tpu.memory_space<vmem>>, vector<1x32xf32>
      %83 = vector.broadcast %82 : vector<1x32xf32> to vector<8x32xf32>
      %84 = arith.addf %55, %83 : vector<8x32xf32>
      %c0_53 = arith.constant 0 : index
      %c0_54 = arith.constant 0 : index
      %c0_55 = arith.constant 0 : index
      %85 = vector.load %arg13[%c0_53, %c0_54, %c0_55] : memref<1x8x32xf32, #tpu.memory_space<vmem>>, vector<1x8x32xf32>
      %86 = vector.shape_cast %85 : vector<1x8x32xf32> to vector<8x32xf32>
      %87 = vector.shape_cast %84 : vector<8x32xf32> to vector<1x8x32xf32>
      tpu.vector_store %arg13[%c0_53, %c0_54, %c0_55], %87 {strides = array<i32>} : memref<1x8x32xf32, #tpu.memory_space<vmem>>, vector<1x8x32xf32>,
    } else {
    }
    %c0 = arith.constant 0 : index
    %c0_1 = arith.constant 0 : index
    %3 = vector.load %arg14[%c0, %c0_1] : memref<8x32xbf16, #tpu.memory_space<vmem>>, vector<8x32xbf16>
    %c0_2 = arith.constant 0 : index
    %c0_3 = arith.constant 0 : index
    %c0_4 = arith.constant 0 : index
    %4 = vector.load %arg5[%c0_2, %c0_3, %c0_4] : memref<1x32x8xbf16, #tpu.memory_space<vmem>>, vector<1x32x8xbf16>
    %5 = vector.shape_cast %4 : vector<1x32x8xbf16> to vector<32x8xbf16>
    %cst = arith.constant dense<0.000000e+00> : vector<8x8xf32>
    %6 = tpu.matmul %3, %5, %cst {dimension_numbers = #tpu.dot_dimension_numbers<[1], [0], [0], [1], [0, 0, 1, 1], [], []>} : vector<8x32xbf16>, vector<32x8xbf16>, vector<8x8xf32> -> vector<8x8xf32>
    %c0_5 = arith.constant 0 : index
    %c0_6 = arith.constant 0 : index
    %c0_7 = arith.constant 0 : index
    %7 = vector.load %arg8[%c0_5, %c0_6, %c0_7] : memref<1x1x8xf32, #tpu.memory_space<vmem>>, vector<1x1x8xf32>
    %8 = vector.shape_cast %7 : vector<1x1x8xf32> to vector<1x8xf32>
    %9 = vector.broadcast %8 : vector<1x8xf32> to vector<8x8xf32>
    %10 = arith.addf %6, %9 : vector<8x8xf32>
    %c0_8 = arith.constant 0 : index
    %c0_9 = arith.constant 0 : index
    %c0_10 = arith.constant 0 : index
    %11 = vector.load %arg6[%c0_8, %c0_9, %c0_10] : memref<1x32x8xbf16, #tpu.memory_space<vmem>>, vector<1x32x8xbf16>
    %12 = vector.shape_cast %11 : vector<1x32x8xbf16> to vector<32x8xbf16>
    %cst_11 = arith.constant dense<0.000000e+00> : vector<8x8xf32>
    %13 = tpu.matmul %3, %12, %cst_11 {dimension_numbers = #tpu.dot_dimension_numbers<[1], [0], [0], [1], [0, 0, 1, 1], [], []>} : vector<8x32xbf16>, vector<32x8xbf16>, vector<8x8xf32> -> vector<8x8xf32>
    %c0_12 = arith.constant 0 : index
    %c0_13 = arith.constant 0 : index
    %c0_14 = arith.constant 0 : index
    %14 = vector.load %arg9[%c0_12, %c0_13, %c0_14] : memref<1x1x8xf32, #tpu.memory_space<vmem>>, vector<1x1x8xf32>
    %15 = vector.shape_cast %14 : vector<1x1x8xf32> to vector<1x8xf32>
    %16 = vector.broadcast %15 : vector<1x8xf32> to vector<8x8xf32>
    %17 = arith.addf %13, %16 : vector<8x8xf32>
    %c0_15 = arith.constant 0 : index
    %c0_16 = arith.constant 0 : index
    %c0_17 = arith.constant 0 : index
    %18 = vector.load %arg7[%c0_15, %c0_16, %c0_17] : memref<1x32x8xbf16, #tpu.memory_space<vmem>>, vector<1x32x8xbf16>
    %19 = vector.shape_cast %18 : vector<1x32x8xbf16> to vector<32x8xbf16>
    %cst_18 = arith.constant dense<0.000000e+00> : vector<8x8xf32>
    %20 = tpu.matmul %3, %19, %cst_18 {dimension_numbers = #tpu.dot_dimension_numbers<[1], [0], [0], [1], [0, 0, 1, 1], [], []>} : vector<8x32xbf16>, vector<32x8xbf16>, vector<8x8xf32> -> vector<8x8xf32>
    %c0_19 = arith.constant 0 : index
    %c0_20 = arith.constant 0 : index
    %c0_21 = arith.constant 0 : index
    %21 = vector.load %arg10[%c0_19, %c0_20, %c0_21] : memref<1x1x8xf32, #tpu.memory_space<vmem>>, vector<1x1x8xf32>
    %22 = vector.shape_cast %21 : vector<1x1x8xf32> to vector<1x8xf32>
    %23 = vector.broadcast %22 : vector<1x8xf32> to vector<8x8xf32>
    %24 = arith.addf %20, %23 : vector<8x8xf32>
    %cst_22 = arith.constant 0.353553385 : f32
    %25 = vector.broadcast %cst_22 : f32 to vector<8x8xf32>
    %26 = arith.mulf %10, %25 : vector<8x8xf32>
    %27 = tpu.transpose %17, [1, 0] : vector<8x8xf32> -> vector<8x8xf32>
    %28 = arith.truncf %26 : vector<8x8xf32> to vector<8x8xbf16>
    %29 = arith.truncf %27 : vector<8x8xf32> to vector<8x8xbf16>
    %cst_23 = arith.constant dense<0.000000e+00> : vector<8x8xf32>
    %30 = tpu.matmul %28, %29, %cst_23 {dimension_numbers = #tpu.dot_dimension_numbers<[1], [0], [0], [1], [0, 0, 1, 1], [], []>} : vector<8x8xbf16>, vector<8x8xbf16>, vector<8x8xf32> -> vector<8x8xf32>
    %cst_24 = arith.constant dense<0xFF800000> : vector<8xf32>
    %31 = vector.multi_reduction <maximumf>, %30, %cst_24 [1] : vector<8x8xf32> to vector<8xf32>
    %32 = vector.shape_cast %31 : vector<8xf32> to vector<8x1xf32>
    %33 = vector.broadcast %32 : vector<8x1xf32> to vector<8x8xf32>
    %34 = arith.subf %30, %33 : vector<8x8xf32>
    %35 = math.exp %34 : vector<8x8xf32>
    %cst_25 = arith.constant dense<0.000000e+00> : vector<8xf32>
    %36 = vector.multi_reduction <add>, %35, %cst_25 [1] : vector<8x8xf32> to vector<8xf32>
    %37 = vector.shape_cast %36 : vector<8xf32> to vector<8x1xf32>
    %38 = tpu.reciprocal %37 {approx = true} : vector<8x1xf32> -> vector<8x1xf32>
    %39 = vector.broadcast %38 : vector<8x1xf32> to vector<8x8xf32>
    %40 = arith.mulf %35, %39 : vector<8x8xf32>
    %41 = arith.truncf %40 : vector<8x8xf32> to vector<8x8xbf16>
    %42 = arith.truncf %24 : vector<8x8xf32> to vector<8x8xbf16>
    %cst_26 = arith.constant dense<0.000000e+00> : vector<8x8xf32>
    %43 = tpu.matmul %41, %42, %cst_26 {dimension_numbers = #tpu.dot_dimension_numbers<[1], [0], [0], [1], [0, 0, 1, 1], [], []>} : vector<8x8xbf16>, vector<8x8xbf16>, vector<8x8xf32> -> vector<8x8xf32>
    %c0_27 = arith.constant 0 : index
    %c0_28 = arith.constant 0 : index
    %c0_29 = arith.constant 0 : index
    %44 = vector.load %arg13[%c0_27, %c0_28, %c0_29] : memref<1x8x32xf32, #tpu.memory_space<vmem>>, vector<1x8x32xf32>
    %45 = vector.shape_cast %44 : vector<1x8x32xf32> to vector<8x32xf32>
    %46 = arith.truncf %43 : vector<8x8xf32> to vector<8x8xbf16>
    %c0_30 = arith.constant 0 : index
    %c0_31 = arith.constant 0 : index
    %c0_32 = arith.constant 0 : index
    %47 = vector.load %arg11[%c0_30, %c0_31, %c0_32] : memref<1x8x32xbf16, #tpu.memory_space<vmem>>, vector<1x8x32xbf16>
    %48 = vector.shape_cast %47 : vector<1x8x32xbf16> to vector<8x32xbf16>
    %cst_33 = arith.constant dense<0.000000e+00> : vector<8x32xf32>
    %49 = tpu.matmul %46, %48, %cst_33 {dimension_numbers = #tpu.dot_dimension_numbers<[1], [0], [0], [1], [0, 0, 1, 1], [], []>} : vector<8x8xbf16>, vector<8x32xbf16>, vector<8x32xf32> -> vector<8x32xf32>
    %50 = arith.addf %45, %49 : vector<8x32xf32>
    %c0_34 = arith.constant 0 : index
    %c0_35 = arith.constant 0 : index
    %c0_36 = arith.constant 0 : index
    %51 = vector.load %arg13[%c0_34, %c0_35, %c0_36] : memref<1x8x32xf32, #tpu.memory_space<vmem>>, vector<1x8x32xf32>
    %52 = vector.shape_cast %51 : vector<1x8x32xf32> to vector<8x32xf32>
    %53 = vector.shape_cast %50 : vector<8x32xf32> to vector<1x8x32xf32>
    tpu.vector_store %arg13[%c0_34, %c0_35, %c0_36], %53 {strides = array<i32>} : memref<1x8x32xf32, #tpu.memory_space<vmem>>, vector<1x8x32xf32>,
    return
  }
  func.func @transform_0(%arg0: i32, %arg1: i32) -> (i32, i32, i32) {
    %c0_i32 = arith.constant 0 : i32
    %c0_i32_0 = arith.constant 0 : i32
    %c0_i32_1 = arith.constant 0 : i32
    return %arg0, %c0_i32, %c0_i32_0 : i32, i32, i32
  }
  func.func @transform_1(%arg0: i32, %arg1: i32) -> (i32, i32) {
    %c0_i32 = arith.constant 0 : i32
    %c0_i32_0 = arith.constant 0 : i32
    %c0_i32_1 = arith.constant 0 : i32
    return %c0_i32, %c0_i32_0 : i32, i32
  }
  func.func @transform_2(%arg0: i32, %arg1: i32) -> (i32, i32) {
    %c0_i32 = arith.constant 0 : i32
    %c0_i32_0 = arith.constant 0 : i32
    %c0_i32_1 = arith.constant 0 : i32
    return %c0_i32, %c0_i32_0 : i32, i32
  }
  func.func @transform_3(%arg0: i32, %arg1: i32) -> (i32, i32, i32) {
    %c0_i32 = arith.constant 0 : i32
    %c0_i32_0 = arith.constant 0 : i32
    %c0_i32_1 = arith.constant 0 : i32
    return %arg1, %c0_i32, %c0_i32_0 : i32, i32, i32
  }
  func.func @transform_4(%arg0: i32, %arg1: i32) -> (i32, i32, i32) {
    %c0_i32 = arith.constant 0 : i32
    %c0_i32_0 = arith.constant 0 : i32
    %c0_i32_1 = arith.constant 0 : i32
    return %arg1, %c0_i32, %c0_i32_0 : i32, i32, i32
  }
  func.func @transform_5(%arg0: i32, %arg1: i32) -> (i32, i32, i32) {
    %c0_i32 = arith.constant 0 : i32
    %c0_i32_0 = arith.constant 0 : i32
    %c0_i32_1 = arith.constant 0 : i32
    return %arg1, %c0_i32, %c0_i32_0 : i32, i32, i32
  }
  func.func @transform_6(%arg0: i32, %arg1: i32) -> (i32, i32, i32) {
    %c0_i32 = arith.constant 0 : i32
    %c0_i32_0 = arith.constant 0 : i32
    %c0_i32_1 = arith.constant 0 : i32
    return %arg1, %c0_i32, %c0_i32_0 : i32, i32, i32
  }
  func.func @transform_7(%arg0: i32, %arg1: i32) -> (i32, i32, i32) {
    %c0_i32 = arith.constant 0 : i32
    %c0_i32_0 = arith.constant 0 : i32
    %c0_i32_1 = arith.constant 0 : i32
    return %arg1, %c0_i32, %c0_i32_0 : i32, i32, i32
  }
  func.func @transform_8(%arg0: i32, %arg1: i32) -> (i32, i32, i32) {
    %c0_i32 = arith.constant 0 : i32
    %c0_i32_0 = arith.constant 0 : i32
    %c0_i32_1 = arith.constant 0 : i32
    return %arg1, %c0_i32, %c0_i32_0 : i32, i32, i32
  }
  func.func @transform_9(%arg0: i32, %arg1: i32) -> (i32, i32, i32) {
    %c0_i32 = arith.constant 0 : i32
    %c0_i32_0 = arith.constant 0 : i32
    %c0_i32_1 = arith.constant 0 : i32
    return %arg1, %c0_i32, %c0_i32_0 : i32, i32, i32
  }
  func.func @transform_10(%arg0: i32, %arg1: i32) -> (i32, i32) {
    %c0_i32 = arith.constant 0 : i32
    %c0_i32_0 = arith.constant 0 : i32
    %c0_i32_1 = arith.constant 0 : i32
    return %c0_i32, %c0_i32_0 : i32, i32
  }
  func.func @transform_11(%arg0: i32, %arg1: i32) -> (i32, i32, i32) {
    %c0_i32 = arith.constant 0 : i32
    %c0_i32_0 = arith.constant 0 : i32
    %c0_i32_1 = arith.constant 0 : i32
    return %arg0, %c0_i32, %c0_i32_0 : i32, i32, i32
  }
}

</mosaic_0001>

<bundles_post_ra>
// kernel: encoder_forward.3
= control target key start
LH: loop header
LB: loop body
LE: loop exit
PB: predicated region body
PF: predicated region fallthrough
CT: control target
= control target key end

     0   :  { %s637_s24 = smov 0   ;;  %s700_s0 = inlined_call_operand.vmem [shape: f32[16,32], index: 0, kind: input, shape index: {}, may-alias: {0,7}]   ;;  %s701_s1 = inlined_call_operand.vmem [shape: f32[1,32], index: 1, kind: input, shape index: {}]   ;;  %s702_s2 = inlined_call_operand.vmem [shape: f32[1,32], index: 2, kind: input, shape index: {}]   ;;  %s703_s3 = inlined_call_operand.vmem [shape: bf16[32,64], index: 3, kind: input, shape index: {}]   ;;  %s704_s4 = inlined_call_operand.vmem [shape: f32[1,64], index: 4, kind: input, shape index: {}]   ;;  %s705_s5 = inlined_call_operand.vmem [shape: bf16[64,32], index: 5, kind: input, shape index: {}]   ;;  %s706_s6 = inlined_call_operand.vmem [shape: f32[1,32], index: 6, kind: input, shape index: {}]   ;;  %s707_s7 = inlined_call_operand.vmem [shape: f32[16,32], index: 7, kind: output, shape index: {}, may-alias: {0,7}]  }
   0x1 LB: > { %s518_s25 = sadd.s32 4294967295, %s593_s24   ;;  %p522_p0 = scmp.ge.s32.totalorder %s593_s24, 1  ;;  %s593_s24 = sphi %s637_s24, %s17_s24  }
   0x2   : > { %p236_p1 = scmp.lt.s32.totalorder %s593_s24, 3 }
   0x4   : > { %p237_p2 = pnand %p522_p0, %p236_p1 }
   0x5   : > { %p266_p3 = scmp.lt.s32.totalorder (!%p237_p2), %s518_s25, 1  ;;  %vm278_vm0 = vcmask (!%p237_p2), 261120   ;;  %v577_v7 = vld [vmem:[%s703_s3] sm:$0xff] (!%p237_p2)   ;;  %v595_v8 = vmov (!%p237_p2), 0.0   ;;  %v578_v9 = vld [vmem:[%s703_s3 + $0x8] sm:$0xff] (!%p237_p2)   ;;  %vm596_vm1 = vmmov (!%p237_p2), 0  }
   0x6   : > { %240 = sbr.rel (%p237_p2) target bundleno = 782 (0x30e), region = 48  ;;  %547 = vmatprep.subr.bf16.mxu0 (!%p237_p2), %v595_v8  ;;  %555 = vmatprep.subr.bf16.mxu1 (!%p237_p2), %v595_v8  ;;  %v525_v14 = vld [vmem:[%s701_s1] ss:$0 sm:$0xff] (!%p237_p2)  ;;  %v580_v21 = vld [vmem:[%s705_s5 + $0x8] sm:$0xff] (!%p237_p2)   ;;  %v581_v22 = vld [vmem:[%s705_s5 + $0x10] sm:$0xff] (!%p237_p2)   ;;  %vm419_vm2 = vcmask (!%p237_p2), 523264  }
   0x7   : > { %548 = vmatpush3.bf16.msra.mxu0 (!%p237_p2), %v577_v7  ;;  %551 = vmatprep.mubr.msk.bf16.mxu0 (!%p237_p2), %vm596_vm1, %v595_v8  ;;  %v526_v16 = vld [vmem:[%s702_s2] ss:$0 sm:$0xff] (!%p237_p2)  ;;  %v582_v23 = vld [vmem:[%s705_s5 + $0x18] sm:$0xff] (!%p237_p2)  }
   0x8   : > { %549 = vmatprep.subr.bf16.mxu0 (!%p237_p2), %v595_v8  ;;  %563 = vmatprep.mubr.msk.bf16.mxu1 (!%p237_p2), %vm596_vm1, %v595_v8  ;;  %v579_v20 = vld [vmem:[%s705_s5] sm:$0xff] (!%p237_p2)  }
   0x9   : > { %556 = vmatpush3.bf16.msra.mxu1 (!%p237_p2), %v579_v20  ;;  %v527_v24 = vld [vmem:[%s704_s4] ss:$0 sm:$0xff] (!%p237_p2) }
   0xa   : > { %557 = vmatprep.subr.bf16.mxu1 (!%p237_p2), %v595_v8  ;;  %v531_v36 = vld [vmem:[%s706_s6] ss:$0 sm:$0xff] (!%p237_p2) }
   0xb   : > { %550 = vmatpush3.bf16.msra.mxu0 (!%p237_p2), %v578_v9 }
   0xd   : > { %s709_s25 = smov (!%p266_p3, %s518_s25), 1  ;;  %558 = vmatpush3.bf16.msra.mxu1 %v580_v21 }
   0xe   : > { %s523_s26 = sshll.u32 %s709_s25, 3  ;;  %559 = vmatprep.subr.bf16.mxu1 %v595_v8 }
   0xf   : > { %s269_s29 = scalar_lea.vmem %s700_s0, %s523_s26  ;;  %s273_s9 = scalar_lea.vmem %s707_s7, %s523_s26 }
  0x10   : > { %v653_v0 = vld [vmem:[%s269_s29] sm:$0xff] }
  0x11   : > { %v279_v1 = vsel %vm278_vm0, %v653_v0, 0.0  ;;  %560 = vmatpush3.bf16.msra.mxu1 %v581_v22 }
  0x12   : > { %280 = vadd.xlane.f32.xlu0 %v279_v1  ;;  %561 = vmatprep.subr.bf16.mxu1 %v595_v8 }
  0x15   : > { %562 = vmatpush3.bf16.msra.mxu1 %v582_v23 }
  0x9f   : > { %v281_v2 = vpop.xlane.xlu0 %280 }
  0xa0   : > { %v283_v3 = vmul.f32 0.03125, %v281_v2 }
  0xa2   : > { %v284_v4 = vsub.f32 %v653_v0, %v283_v3 }
  0xa4   : > { %v285_v5 = vmul.f32 %v284_v4, %v284_v4 }
  0xa6   : > { %v286_v6 = vsel %vm278_vm0, %v285_v5, 0.0 }
  0xa7   : > { %287 = vadd.xlane.f32.xlu0 %v286_v6 }
 0x134   : > { %v288_v10 = vpop.xlane.xlu0 %287 }
 0x135   : > { %v289_v11 = vmul.f32 0.03125, %v288_v10 }
 0x137   : > { %v290_v12 = vadd.f32 1e-05, %v289_v11 }
 0x139   : > { %583 = vrsqrt.f32 %v290_v12 }
 0x143   : > { %v584_v13 = vpop.eup %583 }
 0x144   : > { %v292_v15 = vmul.f32 %v584_v13, %v284_v4 }
 0x146   : > { %v299_v17 = vmul.f32 %v525_v14, %v292_v15 }
 0x148   : > { %v306_v18 = vadd.f32 %v526_v16, %v299_v17 }
 0x14a   : > { %v307_v19 = vpack.c.bf16 %v306_v18, %v306_v18 }
 0x14c   : > { %552 = vmatmul.mubr.msk.bf16.vlgmr.msra.gmra.mrb[0].mxu0 %vm278_vm0, %v307_v19 }
 0x21f   : > { %v368_v25 = vpop.f32.mrb[0].mxu0 }
 0x220   : > { %v369_v26 = vadd.f32 %v527_v24, %v368_v25  ;;  %v553_v27 = vpop.f32.mrb[1].mxu0 }
 0x221   : > { %v371_v28 = vpop.f32.mrb[2].mxu0 }
 0x222   : > { %v375_v29 = vmul.f32 0.70710677, %v369_v26  ;;  %v554_v30 = vpop.f32.mrb[3].mxu0  ;;  %v374_v32 = vmul.f32 0.5, %v369_v26 }
 0x224   : > { %585 = verf.f32 %v375_v29 }
 0x22e   : > { %v586_v31 = vpop.eup %585 }
 0x22f   : > { %v377_v33 = vadd.f32 1.0, %v586_v31 }
 0x231   : > { %v378_v34 = vmul.f32 %v377_v33, %v374_v32 }
 0x233   : > { %v379_v35 = vpack.c.bf16 %v378_v34, %v378_v34 }
 0x235   : > { %564 = vmatmul.mubr.msk.bf16.vlgmr.msra.gmra.mrb[0].mxu1 %vm419_vm2, %v379_v35 }
 0x308   : > { %v457_v37 = vpop.f32.mrb[0].mxu1 }
 0x309   : > { %v458_v38 = vadd.f32 %v531_v36, %v457_v37  ;;  %v565_v39 = vpop.f32.mrb[1].mxu1 }
 0x30a   : > { %v460_v40 = vpop.f32.mrb[2].mxu1 }
 0x30b   : > { %v463_v41 = vadd.f32 %v458_v38, %v653_v0  ;;  %v566_v42 = vpop.f32.mrb[3].mxu1 }
 0x30d   : > { %464 = vst.msk [vmem:[%s273_s9] sm:$0xff] %vm278_vm0, %v463_v41 }
 0x30e PF: > { %s17_s24 = sadd.s32 1, %s593_s24  }
 0x30f   : > { %p14_p4 = scmp.ge.s32.totalorder %s17_s24, 4  }
 0x311   :  { %16 = sbr.rel (!%p14_p4) target bundleno = 1 (0x1), region = 78 }

// kernel: encoder_forward.2
= control target key start
LH: loop header
LB: loop body
LE: loop exit
PB: predicated region body
PF: predicated region fallthrough
CT: control target
= control target key end

     0   :  { %s1339_s17 = smov 0   ;;  %s1341_s18 = smov 0   ;;  %s1485_s0 = inlined_call_operand.vmem [shape: f32[2,8,32], index: 0, kind: input, shape index: {}, may-alias: {0,11}]   ;;  %s1486_s1 = inlined_call_operand.vmem [shape: f32[1,32], index: 1, kind: input, shape index: {}]   ;;  %s1487_s2 = inlined_call_operand.vmem [shape: f32[1,32], index: 2, kind: input, shape index: {}]   ;;  %s1488_s3 = inlined_call_operand.vmem [shape: bf16[4,32,8], index: 3, kind: input, shape index: {}]   ;;  %s1489_s4 = inlined_call_operand.vmem [shape: bf16[4,32,8], index: 4, kind: input, shape index: {}]   ;;  %s1490_s5 = inlined_call_operand.vmem [shape: bf16[4,32,8], index: 5, kind: input, shape index: {}]   ;;  %s1491_s6 = inlined_call_operand.vmem [shape: f32[4,1,8], index: 6, kind: input, shape index: {}]   ;;  %s1492_s7 = inlined_call_operand.vmem [shape: f32[4,1,8], index: 7, kind: input, shape index: {}]   ;;  %s1493_s8 = inlined_call_operand.vmem [shape: f32[4,1,8], index: 8, kind: input, shape index: {}]   ;;  %s1494_s9 = inlined_call_operand.vmem [shape: bf16[4,8,32], index: 9, kind: input, shape index: {}]   ;;  %s1495_s10 = inlined_call_operand.vmem [shape: f32[1,32], index: 10, kind: input, shape index: {}]   ;;  %s1496_s11 = inlined_call_operand.vmem [shape: f32[2,8,32], index: 11, kind: output, shape index: {}, may-alias: {0,11}]  }
   0x1   :  { %1501 = sst [smem:[#allocation9_spill]] %s1485_s0  ;;  %s1343_s19 = smov 0  }
   0x2   :  { %1502 = sst [smem:[#allocation10_spill]] %s1488_s3  ;;  %s1345_s20 = smov 0  }
   0x3   :  { %1503 = sst [smem:[#allocation11_spill]] %s1489_s4  ;;  %s1347_s21 = smov 0  }
   0x4 LB: > { %1504 = sst [smem:[#allocation3_spill]] %s1267_s19  ;;  %s30_s22 = sadd.s32 1, %s1267_s19  ;;  %s1275_s21 = sphi %s1347_s21, %s21_s21   ;;  %s1271_s20 = sphi %s1345_s20, %s1518_s20   ;;  %s1267_s19 = sphi %s1343_s19, %s1517_s19   ;;  %s1263_s18 = sphi %s1341_s18, %s1516_s18   ;;  %s1259_s17 = sphi %s1339_s17, %s1515_s17  }
   0x5   : > { %1505 = sst [smem:[#allocation4_spill]] %s1271_s20  ;;  %s33_s23 = sadd.s32 1, %s1271_s20 }
   0x6   : > { %1506 = sst [smem:[#allocation5_spill]] %s1275_s21  ;;  %p31_p0 = scmp.ge.s32.totalorder %s30_s22, 4 }
   0x7   : > { %p1092_p1 = scmp.ge.s32.totalorder %s1275_s21, 1  ;;  %p411_p2 = scmp.lt.s32.totalorder %s1275_s21, 9 }
   0x8   : > { %s1520_s22 = smov (%p31_p0, %s30_s22), 0  ;;  %s1522_s23 = smov (!%p31_p0, %s33_s23), %s1271_s20 }
   0x9   : > { %1507 = sst [smem:[#allocation6_spill]] %s1520_s22  ;;  %p412_p3 = pnand %p1092_p1, %p411_p2 }
   0xa   : > { %p35_p4 = scmp.ge.s32.totalorder %s1522_s23, 2 }
   0xb   : > { %415 = sbr.rel (%p412_p3) target bundleno = 1658 (0x67a), region = 64 }
   0xc   : > { %s1524_s23 = smov (%p35_p4, %s1522_s23), 0 }
   0xd   : > { %1508 = sst [smem:[#allocation7_spill]] %s1524_s23 }
  0x12   : > { %p477_p5 = scmp.lt.s32.totalorder %s1263_s18, 1  ;;  %p481_p6 = scmp.lt.s32.totalorder %s1259_s17, 3 }
  0x13   : > { %s1509_s0 = sld [smem:[#allocation9_spill]]  ;;  %s1510_s3 = sld [smem:[#allocation10_spill]] }
  0x14   : > { %s1526_s18 = smov (!%p477_p5, %s1263_s18), 1  ;;  %s1512_s4 = sld [smem:[#allocation11_spill]] }
  0x15   : > { %s1373_s24 = scalar_select %p481_p6, %s1259_s17, 3 }
  0x16   : > { %s1093_s25 = sshll.u32 %s1526_s18, 3  ;;  %p1102_p7 = scmp.ne.s32.totalorder %s1259_s17, 0 }
  0x17   : > { %s1123_s29 = sshll.u32 %s1373_s24, 4  ;;  %s498_s26 = scalar_lea.vmem %s1491_s6, %s1373_s24  ;;  %vm521_vm0 = vcmask (!%p1102_p7), 261120   ;;  %v1105_v1 = vld [vmem:[%s1495_s10] ss:$0 sm:$0xff] (!%p1102_p7)  ;;  %vm551_vm1 = vcmask (!%p1102_p7), 257024  }
  0x18   : > { %s1392_s20 = scalar_lea.vmem %s1490_s5, %s1123_s29  ;;  %s501_s30 = scalar_lea.vmem %s1492_s7, %s1373_s24  ;;  %v1103_v13 = vld [vmem:[%s1486_s1] ss:$0 sm:$0xff] (!%p1102_p7) }
  0x19   : > { %s480_s28 = scalar_lea.vmem %s1509_s0, %s1093_s25  ;;  %s1382_s13 = scalar_lea.vmem %s1510_s3, %s1123_s29  ;;  %v1104_v15 = vld [vmem:[%s1487_s2] ss:$0 sm:$0xff] (!%p1102_p7) }
  0x1a   : > { %1511 = sst [smem:[#allocation8_spill]] %s1382_s13  ;;  %s1387_s16 = scalar_lea.vmem %s1512_s4, %s1123_s29  ;;  %v518_v0 = vld [vmem:[%s480_s28] sm:$0xff] (!%p1102_p7) }
  0x1b   : > { %s504_s21 = scalar_lea.vmem %s1493_s8, %s1373_s24  ;;  %s1100_s14 = sshll.u32 %s1373_s24, 2  ;;  %v522_v2 = vsel (!%p1102_p7), %vm521_vm0, %v518_v0, 0.0  ;;  %v560_v3 = vadd.f32 (!%p1102_p7), %v1105_v1, %v518_v0 }
  0x1c   : > { %s1410_s13 = scalar_lea.vmem %s1496_s11, %s1093_s25  ;;  %s1415_s29 = scalar_lea.vmem %s1494_s9, %s1100_s14  ;;  %523 = vadd.xlane.f32.xlu0 (!%p1102_p7), %v522_v2 }
  0x1d   : > { %517 = sbr.rel (%p1102_p7) target bundleno = 343 (0x157), region = 68  ;;  %561 = vst.msk [vmem:[%s1410_s13] sm:$0xff] (!%p1102_p7), %vm521_vm0, %v560_v3 }
  0xa9   : > { %v524_v4 = vpop.xlane.xlu0 %523 }
  0xaa   : > { %v526_v5 = vmul.f32 0.03125, %v524_v4 }
  0xac   : > { %v527_v6 = vsub.f32 %v518_v0, %v526_v5 }
  0xae   : > { %v528_v7 = vmul.f32 %v527_v6, %v527_v6 }
  0xb0   : > { %v529_v8 = vsel %vm521_vm0, %v528_v7, 0.0 }
  0xb1   : > { %530 = vadd.xlane.f32.xlu0 %v529_v8 }
 0x13e   : > { %v531_v9 = vpop.xlane.xlu0 %530 }
 0x13f   : > { %v532_v10 = vmul.f32 0.03125, %v531_v9 }
 0x141   : > { %v533_v11 = vadd.f32 1e-05, %v532_v10 }
 0x143   : > { %1225 = vrsqrt.f32 %v533_v11 }
 0x14d   : > { %v1226_v12 = vpop.eup %1225 }
 0x14e   : > { %v535_v14 = vmul.f32 %v1226_v12, %v527_v6 }
 0x150   : > { %v542_v16 = vmul.f32 %v1103_v13, %v535_v14 }
 0x152   : > { %v549_v17 = vadd.f32 %v1104_v15, %v542_v16 }
 0x154   : > { %v550_v18 = vpack.c.bf16 %v549_v17, %v549_v17 }
 0x156   : > { %552 = vst.msk [vmem:[#allocation2] sm:$0xf] %vm551_vm1, %v550_v18 }
 0x157 PF: > { %s1513_s28 = sld [smem:[#allocation8_spill]]  ;;  %v1227_v19 = vld [vmem:[%s1387_s16] sm:$0xff]   ;;  %v1277_v20 = vmov 0.0   ;;  %v1228_v21 = vld [vmem:[%s1387_s16 + $0x8] sm:$0xff]   ;;  %vm1278_vm2 = vmmov 0   ;;  %vm586_vm3 = vcmask 261120  }
 0x158   : > { %1149 = vmatprep.subr.bf16.mxu1 %v1277_v20  ;;  %1141 = vmatprep.subr.bf16.mxu0 %v1277_v20  ;;  %v1110_v25 = vld [vmem:[%s501_s30] ss:$0 sm:$0xff]  ;;  %vm795_vm4 = vcmask 1043456   ;;  %vm791_vm5 = vcmask 64512   ;;  %v1232_v43 = vld [vmem:[%s1392_s20 + $0x8] sm:$0xff]  }
 0x159   : > { %1150 = vmatpush3.bf16.msra.mxu1 %v1227_v19  ;;  %1153 = vmatprep.mubr.msk.bf16.mxu1 %vm1278_vm2, %v1277_v20  ;;  %v1106_v35 = vld [vmem:[%s498_s26] ss:$0 sm:$0xff] }
 0x15a   : > { %1151 = vmatprep.subr.bf16.mxu1 %v1277_v20  ;;  %1145 = vmatprep.mubr.msk.bf16.mxu0 %vm1278_vm2, %v1277_v20  ;;  %v1231_v42 = vld [vmem:[%s1392_s20] sm:$0xff]  }
 0x15b   : > { %v1114_v57 = vld [vmem:[%s504_s21] ss:$0 sm:$0xff] }
 0x15c   : > { %v900_v2 = vld [vmem:[%s1415_s29] sm:$0xf] }
 0x15d   : > { %v1229_v22 = vld [vmem:[%s1513_s28] sm:$0xff]   ;;  %v1230_v23 = vld [vmem:[%s1513_s28 + $0x8] sm:$0xff]   ;;  %1152 = vmatpush3.bf16.msra.mxu1 %v1228_v21  ;;  %v905_v3 = vsel %vm795_vm4, %v900_v2, 0 }
 0x15e   : > { %1142 = vmatpush3.bf16.msra.mxu0 %v1229_v22  ;;  %v562_v24 = vld [vmem:[#allocation2] sm:$0xf]  ;;  %1165 = vmatprep.subr.bf16.mxu1 %v1277_v20 }
 0x15f   : > { %1143 = vmatprep.subr.bf16.mxu0 %v1277_v20  ;;  %v898_v9 = vld [vmem:[%s1410_s13] sm:$0xff] }
 0x160   : > { %1154 = vmatmul.mubr.msk.bf16.vlgmr.msra.gmra.mrb[0].mxu1 %vm586_vm3, %v562_v24 }
 0x161   : > { %1167 = vmatprep.mubr.msk.bf16.mxu1 %vm1278_vm2, %v1277_v20 }
 0x162   : > { %1144 = vmatpush3.bf16.msra.mxu0 %v1230_v23 }
 0x163   : > { %1157 = vmatprep.subr.bf16.mxu0 %v1277_v20 }
 0x165   : > { %1146 = vmatmul.mubr.msk.bf16.vlgmr.msra.gmra.mrb[0].mxu0 %vm586_vm3, %v562_v24 }
 0x166   : > { %1161 = vmatprep.mubr.msk.bf16.mxu0 %vm1278_vm2, %v1277_v20  ;;  %1158 = vmatpush3.bf16.msra.mxu0 %v1231_v42 }
 0x167   : > { %1159 = vmatprep.subr.bf16.mxu0 %v1277_v20 }
 0x16a   : > { %1160 = vmatpush3.bf16.msra.mxu0 %v1232_v43 }
 0x16b   : > { %1171 = vmatprep.subr.bf16.mxu0 %v1277_v20 }
 0x16d   : > { %1162 = vmatmul.mubr.msk.bf16.vlgmr.msra.gmra.mrb[4].mxu0 %vm586_vm3, %v562_v24 }
 0x16e   : > { %1173 = vmatprep.mubr.msk.bf16.mxu0 %vm1278_vm2, %v1277_v20 }
 0x233   : > { %v687_v26 = vpop.f32.mrb[0].mxu1 }
 0x234   : > { %v1155_v27 = vpop.f32.mrb[1].mxu1  ;;  %v688_v28 = vadd.f32 %v1110_v25, %v687_v26 }
 0x235   : > { %v690_v29 = vpop.f32.mrb[2].mxu1 }
 0x236   : > { %757 = vxpose.xlu0.b32.start.end [1/1] (short) (narrow) %v688_v28, 8  ;;  %v1156_v31 = vpop.f32.mrb[3].mxu1 }
 0x238   : > { %v624_v30 = vpop.f32.mrb[0].mxu0 }
 0x239   : > { %v1147_v32 = vpop.f32.mrb[1].mxu0  ;;  %v625_v36 = vadd.f32 %v1106_v35, %v624_v30 }
 0x23a   : > { %v627_v33 = vpop.f32.mrb[2].mxu0 }
 0x23b   : > { %v1148_v34 = vpop.f32.mrb[3].mxu0  ;;  %v756_v37 = vmul.f32 0.35355338, %v625_v36 }
 0x23d   : > { %v789_v41 = vpack.c.bf16 %v756_v37, %v756_v37 }
 0x240   : > { %v750_v54 = vpop.f32.mrb[4].mxu0 }
 0x241   : > { %v1163_v55 = vpop.f32.mrb[5].mxu0  ;;  %v751_v59 = vadd.f32 %v1114_v57, %v750_v54 }
 0x242   : > { %v753_v56 = vpop.f32.mrb[6].mxu0 }
 0x243   : > { %v1164_v58 = vpop.f32.mrb[7].mxu0  ;;  %v851_v60 = vpack.c.bf16 %v751_v59, %v751_v59 }
 0x245   : > { %v856_v61 = vsel %vm795_vm4, %v851_v60, 0 }
 0x246   : > { %1172 = vmatpush3.bf16.msra.mxu0 %v856_v61 }
 0x2b6   : > { %v773_v38 = vpop.trf.xlu0 }
 0x2b7   : > { %v790_v39 = vpack.c.bf16 %v773_v38, %v773_v38 }
 0x2b9   : > { %v797_v40 = vsel %vm795_vm4, %v790_v39, 0 }
 0x2ba   : > { %1166 = vmatpush3.bf16.msra.mxu1 %v797_v40 }
 0x2bb   : > { %1177 = vmatprep.subr.bf16.mxu1 %v1277_v20 }
 0x2bd   : > { %1168 = vmatmul.mubr.msk.bf16.vlgmr.msra.gmra.mrb[4].mxu1 %vm791_vm5, %v789_v41 }
 0x2be   : > { %1179 = vmatprep.mubr.msk.bf16.mxu1 %vm1278_vm2, %v1277_v20  ;;  %1178 = vmatpush3.bf16.msra.mxu1 %v905_v3 }
 0x390   : > { %v833_v44 = vpop.f32.mrb[4].mxu1 }
 0x391   : > { %v839_v45 = vsel %vm791_vm5, %v833_v44, -inf  ;;  %v1169_v46 = vpop.f32.mrb[5].mxu1 }
 0x392   : > { %840 = vmax.xlane.f32.xlu0 %v839_v45  ;;  %v836_v47 = vpop.f32.mrb[6].mxu1 }
 0x393   : > { %v1170_v48 = vpop.f32.mrb[7].mxu1 }
 0x41f   : > { %v841_v49 = vpop.xlane.xlu0 %840 }
 0x420   : > { %v842_v50 = vsub.f32 %v833_v44, %v841_v49 }
 0x422   : > { %v843_v51 = vmul.f32 1.442695, %v842_v50 }
 0x424   : > { %1233 = vpow2.f32 %v843_v51 }
 0x42e   : > { %v1234_v52 = vpop.eup %1233 }
 0x42f   : > { %v845_v53 = vsel %vm791_vm5, %v1234_v52, 0.0 }
 0x430   : > { %846 = vadd.xlane.f32.xlu1 %v845_v53 }
 0x4bd   : > { %v847_v62 = vpop.xlane.xlu1 %846 }
 0x4be   : > { %1235 = vrcp.f32 %v847_v62 }
 0x4c8   : > { %v1236_v63 = vpop.eup %1235 }
 0x4c9   : > { %v849_v0 = vmul.f32 %v1236_v63, %v1234_v52 }
 0x4cb   : > { %v850_v1 = vpack.c.bf16 %v849_v0, %v849_v0 }
 0x4cd   : > { %1174 = vmatmul.mubr.msk.bf16.vlgmr.msra.gmra.mrb[8].mxu0 %vm791_vm5, %v850_v1 }
 0x5a0   : > { %v892_v4 = vpop.f32.mrb[8].mxu0 }
 0x5a1   : > { %v899_v5 = vpack.c.bf16 %v892_v4, %v892_v4  ;;  %v1175_v6 = vpop.f32.mrb[9].mxu0 }
 0x5a2   : > { %v895_v7 = vpop.f32.mrb[10].mxu0 }
 0x5a3   : > { %v1176_v8 = vpop.f32.mrb[11].mxu0  ;;  %1180 = vmatmul.mubr.msk.bf16.vlgmr.msra.gmra.mrb[8].mxu1 %vm791_vm5, %v899_v5 }
 0x676   : > { %v941_v10 = vpop.f32.mrb[8].mxu1 }
 0x677   : > { %v947_v11 = vadd.f32 %v941_v10, %v898_v9  ;;  %v1181_v12 = vpop.f32.mrb[9].mxu1 }
 0x678   : > { %v944_v13 = vpop.f32.mrb[10].mxu1 }
 0x679   : > { %948 = vst.msk [vmem:[%s1410_s13] sm:$0xff] %vm586_vm3, %v947_v11  ;;  %v1182_v14 = vpop.f32.mrb[11].mxu1 }
 0x67a PF: > { %s1514_s21 = sld [smem:[#allocation5_spill]]  ;;  %s1515_s17 = sld [smem:[#allocation3_spill]] }
 0x67b   : > { %s1516_s18 = sld [smem:[#allocation4_spill]]  ;;  %s1517_s19 = sld [smem:[#allocation6_spill]] }
 0x67c   : > { %s1518_s20 = sld [smem:[#allocation7_spill]] }
 0x680   : > { %s21_s21 = sadd.s32 1, %s1514_s21  }
 0x681   : > { %p18_p8 = scmp.ge.s32.totalorder %s21_s21, 10  }
 0x683   :  { %20 = sbr.rel (!%p18_p8) target bundleno = 4 (0x4), region = 119 }

</bundles_post_ra>
